<compile_context>
chip_gen: v5e
topology: v5e:2x2
jax: 0.10.0
libtpu: 0.0.40
codegen_flags: <defaults>
</compile_context>

<pallas_src>
import jax
import jax.numpy as jnp
from jax.experimental import pallas as pl
from jax.experimental.pallas import tpu as pltpu


def _round_up(x, m):
    return ((x + m - 1) // m) * m


def _vmem_capacity_bytes():
    try:
        return int(pltpu.get_tpu_info().vmem_capacity_bytes)
    except Exception:
        return 64 * 1024 * 1024  # conservative (v7x-sized) fallback


# ------------------------------ streaming path ------------------------------ #

def _stream_kernel(logp_ref, tgt_ref, mask_ref, num_ref):
    """Per-grid-step partial numerator; each step owns its own (1,1,128) block."""
    logp = logp_ref[...]                               # (tile_n, V), input dtype (no upcast)
    tgt = tgt_ref[...]                                 # (tile_n, 1) int32
    mask = mask_ref[...]                               # (tile_n, 1) float32

    # Gather via compare + select (no 0 * -inf NaN hazard of a one-hot multiply).
    col = jax.lax.broadcasted_iota(jnp.int32, (1, logp.shape[1]), 1)
    picked = jnp.where(col == tgt, logp, jnp.zeros((), logp.dtype))
    # Exact even in bf16: at most one nonzero lane per row.  Mosaic lowers the
    # lane reduce as VALU vreg accumulation plus one cross-lane (XLU) reduce per
    # row tile, so XLU work stays tiny relative to the stream.
    gathered = jnp.sum(picked, axis=1, keepdims=True).astype(jnp.float32)
    # NaN-safe gate: padded tail rows (undefined logp contents) and masked
    # tokens contribute exactly zero.  Keep this a `where`, NOT a multiply.
    gathered = jnp.where(mask != 0.0, gathered, 0.0)

    num = -jnp.sum(gathered * mask)
    num_ref[...] = num + jnp.zeros(num_ref.shape, num_ref.dtype)


def _stream_num(logp, tgt, msk, *, tile_n, vmem_cap):
    N, V = logp.shape
    itemsize = jnp.dtype(logp.dtype).itemsize

    if tile_n is None:
        budget = max(1 << 20, vmem_cap // 4)           # generation-aware block budget
        tile_n = budget // max(1, V * itemsize)
        tile_n = min(tile_n, 4096)
    tile_n = max(8, (int(tile_n) // 8) * 8)
    if N >= 16:
        # Keep at least 2 blocks so the "parallel" axis can be split across
        # v7x's two TensorCores.
        tile_n = min(tile_n, _round_up(-(-N // 2), 8))

    if tile_n >= N:
        tile_n, grid_n, n_pad = N, 1, N
    else:
        grid_n = -(-N // tile_n)
        n_pad = grid_n * tile_n

    if n_pad != N:
        pad = n_pad - N
        # Pad only the small per-row operands; padded rows get mask == 0 and are
        # removed by the where-gate in the kernel (see invariant above).
        tgt = jnp.pad(tgt, ((0, pad), (0, 0)))
        msk = jnp.pad(msk, ((0, pad), (0, 0)))

    block_bytes = tile_n * V * itemsize
    vmem_limit = 2 * block_bytes + (8 << 20)           # double-buffered block + headroom
    vmem_limit = int(min(max(vmem_limit, 32 << 20), max(vmem_cap - (4 << 20), 32 << 20)))

    num_parts = pl.pallas_call(
        _stream_kernel,
        out_shape=jax.ShapeDtypeStruct((grid_n, 1, 128), jnp.float32),
        grid_spec=pltpu.PrefetchScalarGridSpec(
            num_scalar_prefetch=0,
            grid=(grid_n,),
            in_specs=[
                pl.BlockSpec((tile_n, V), lambda i: (i, 0)),   # default depth-2 pipeline
                pl.BlockSpec((tile_n, 1), lambda i: (i, 0)),
                pl.BlockSpec((tile_n, 1), lambda i: (i, 0)),
            ],
            out_specs=pl.BlockSpec((1, 1, 128), lambda i: (i, 0, 0)),
        ),
        compiler_params=pltpu.CompilerParams(
            dimension_semantics=("parallel",),
            vmem_limit_bytes=vmem_limit,
        ),
    )(logp, tgt, msk)
    return jnp.sum(num_parts[:, 0, 0])


# --------------------------- deferred-gather path --------------------------- #

def _make_gather_kernel(tile_n, n_rows):
    def kernel(tgt_s_ref, tgt_ref, mask_ref, logp_hbm, num_ref, buf, sem):
        pid = pl.program_id(0)

        # Issue one small DMA per row: only the 128-lane slab holding target[i].
        @pl.loop(0, tile_n)
        def _issue(r):
            i = jnp.minimum(pid * tile_n + r, n_rows - 1)     # clamp padded tail rows
            slab = tgt_s_ref[i] // 128
            pltpu.make_async_copy(logp_hbm.at[i, slab], buf.at[r], sem.at[r]).start()

        # Batched waits for the whole row tile.
        @pl.loop(0, tile_n)
        def _wait(r):
            pltpu.make_async_copy(logp_hbm.at[0, 0], buf.at[r], sem.at[r]).wait()

        lane = jax.lax.broadcasted_iota(jnp.int32, (1, 128), 1)
        local = tgt_ref[...] % 128                            # lane within fetched slab
        sel = jnp.where(lane == local, buf[...], jnp.zeros((), buf.dtype))
        gathered = jnp.sum(sel, axis=1, keepdims=True).astype(jnp.float32)
        mask = mask_ref[...]
        gathered = jnp.where(mask != 0.0, gathered, 0.0)      # NaN-safe gate (see invariant)
        num = -jnp.sum(gathered * mask)
        num_ref[...] = num + jnp.zeros(num_ref.shape, num_ref.dtype)

    return kernel


def _gather_num(logp, tgt, msk, *, tile_n):
    N, V = logp.shape
    assert V % 128 == 0 and jnp.dtype(logp.dtype).itemsize == 4
    S = V // 128
    logp3 = logp.reshape(N, S, 128)                           # metadata-only reshape

    if tile_n is None:
        tile_n = 128                                          # 128 in-flight row DMAs / step
    tile_n = max(8, min((int(tile_n) // 8) * 8, 128))
    if N >= 16:
        tile_n = min(tile_n, _round_up(-(-N // 2), 8))        # grid_n >= 2 for v7x megacore

    grid_n = -(-N // tile_n)
    n_pad = grid_n * tile_n
    tgt_s = tgt[:, 0]
    if n_pad != N:
        pad = n_pad - N
        tgt = jnp.pad(tgt, ((0, pad), (0, 0)))
        msk = jnp.pad(msk, ((0, pad), (0, 0)))
        tgt_s = jnp.pad(tgt_s, (0, pad))

    num_parts = pl.pallas_call(
        _make_gather_kernel(tile_n, N),
        out_shape=jax.ShapeDtypeStruct((grid_n, 1, 128), jnp.float32),
        grid_spec=pltpu.PrefetchScalarGridSpec(
            num_scalar_prefetch=1,                            # shifted targets -> SMEM
            grid=(grid_n,),
            in_specs=[
                pl.BlockSpec((tile_n, 1), lambda i, _t: (i, 0)),
                pl.BlockSpec((tile_n, 1), lambda i, _t: (i, 0)),
                pl.BlockSpec(memory_space=pl.ANY),            # log-probs stay in HBM
            ],
            out_specs=pl.BlockSpec((1, 1, 128), lambda i, _t: (i, 0, 0)),
            scratch_shapes=[
                pltpu.VMEM((tile_n, 128), logp.dtype),
                pltpu.SemaphoreType.DMA((tile_n,)),
            ],
        ),
        compiler_params=pltpu.CompilerParams(
            dimension_semantics=("parallel",),
        ),
    )(tgt_s, tgt, msk, logp3)
    return jnp.sum(num_parts[:, 0, 0])


# --------------------------------- wrapper ---------------------------------- #

def language_model_criterion(inp, target, mask, *, tile_n=None, use_gather=None):
    """inp: (B, T, V) log-probs (f32 or bf16); target: (B, T) int; mask: (B, T) float."""
    B, T, V = inp.shape
    N = B * T

    # Plain-JAX glue: shift-with-wrap of target + flatten (no dtype upcast of inp).
    target_shifted = jnp.concatenate([target[:, 1:], target[:, :1]], axis=1)
    logp = inp.reshape(N, V)                                  # keep input dtype
    tgt = target_shifted.reshape(N, 1).astype(jnp.int32)
    msk = mask.reshape(N, 1).astype(jnp.float32)
    den = jnp.sum(msk)                                        # exact; kernel keeps one output

    itemsize = jnp.dtype(inp.dtype).itemsize
    vmem_cap = _vmem_capacity_bytes()

    gather_ok = (V % 128 == 0) and (itemsize == 4)
    if use_gather is None:
        # Use the deferred per-row slab gather when streaming the whole vocab is
        # clearly wasteful (or would not even fit a minimum 8-row block).
        use_gather = gather_ok and (V >= 65536 or 16 * V * itemsize > vmem_cap // 2)
    use_gather = bool(use_gather) and gather_ok

    if use_gather:
        num = _gather_num(logp, tgt, msk, tile_n=tile_n)
    else:
        num = _stream_num(logp, tgt, msk, tile_n=tile_n, vmem_cap=vmem_cap)
    return num / den


def _reference(inp, target, mask):
    B, T, V = inp.shape
    target_shifted = jnp.concatenate([target[:, 1:], target[:, :1]], axis=1)
    logp = inp.reshape(-1, V).astype(jnp.float32)
    tgt = target_shifted.reshape(-1)
    msk = mask.reshape(-1).astype(jnp.float32)
    gathered = jnp.take_along_axis(logp, tgt[:, None], axis=1)[:, 0]
    return jnp.sum(-gathered * msk) / jnp.sum(msk)


if __name__ == "__main__":
    # 1) Small f32, streaming path, auto tiling (grid_n == 2 so v7x can split it).
    k1, k2, k3 = jax.random.split(jax.random.PRNGKey(0), 3)
    B, T, V = 2, 8, 32
    logp = jax.nn.log_softmax(jax.random.normal(k1, (B, T, V), jnp.float32), axis=-1)
    target = jax.random.randint(k2, (B, T), 0, V, dtype=jnp.int32)
    mask = (jax.random.uniform(k3, (B, T)) > 0.3).astype(jnp.float32)
    mask = mask.at[0, 0].set(1.0)                      # keep sum(mask) > 0
    out = jax.block_until_ready(language_model_criterion(logp, target, mask))
    ref = _reference(logp, target, mask)
    assert jnp.allclose(out, ref, rtol=1e-5, atol=1e-6), (out, ref)

    # 2) Ragged N (21) + explicit small tiles, streaming path (multi-block tail).
    k4, k5, k6 = jax.random.split(jax.random.PRNGKey(1), 3)
    B2, T2, V2 = 3, 7, 256
    lp2 = jax.nn.log_softmax(jax.random.normal(k4, (B2, T2, V2), jnp.float32), axis=-1)
    tg2 = jax.random.randint(k5, (B2, T2), 0, V2, dtype=jnp.int32)
    mk2 = (jax.random.uniform(k6, (B2, T2)) > 0.3).astype(jnp.float32)
    mk2 = mk2.at[0, 0].set(1.0)
    out2 = jax.block_until_ready(language_model_criterion(lp2, tg2, mk2, tile_n=8))
    ref2 = _reference(lp2, tg2, mk2)
    assert jnp.allclose(out2, ref2, rtol=1e-5, atol=1e-6), (out2, ref2)

    # 3) bf16 streaming path (no in-kernel f32 upcast of the streamed tile).
    k7, k8, k9 = jax.random.split(jax.random.PRNGKey(2), 3)
    B3, T3, V3 = 2, 8, 512
    lp3 = jax.nn.log_softmax(jax.random.normal(k7, (B3, T3, V3), jnp.float32), axis=-1)
    lp3 = lp3.astype(jnp.bfloat16)
    tg3 = jax.random.randint(k8, (B3, T3), 0, V3, dtype=jnp.int32)
    mk3 = (jax.random.uniform(k9, (B3, T3)) > 0.3).astype(jnp.float32)
    mk3 = mk3.at[0, 0].set(1.0)
    out3 = jax.block_until_ready(language_model_criterion(lp3, tg3, mk3))
    ref3 = _reference(lp3, tg3, mk3)
    assert jnp.allclose(out3, ref3, rtol=1e-5, atol=1e-6), (out3, ref3)

    # 4) Deferred-gather path (forced at small V to exercise it; default gate is V >= 64k),
    #    ragged N to exercise the clamped padded-row DMAs.
    k10, k11, k12 = jax.random.split(jax.random.PRNGKey(3), 3)
    B4, T4, V4 = 3, 7, 256
    lp4 = jax.nn.log_softmax(jax.random.normal(k10, (B4, T4, V4), jnp.float32), axis=-1)
    tg4 = jax.random.randint(k11, (B4, T4), 0, V4, dtype=jnp.int32)
    mk4 = (jax.random.uniform(k12, (B4, T4)) > 0.3).astype(jnp.float32)
    mk4 = mk4.at[0, 0].set(1.0)
    out4 = jax.block_until_ready(
        language_model_criterion(lp4, tg4, mk4, tile_n=8, use_gather=True))
    ref4 = _reference(lp4, tg4, mk4)
    assert jnp.allclose(out4, ref4, rtol=1e-5, atol=1e-6), (out4, ref4)

    print("KERNEL_OK")
</pallas_src>

<mosaic_0001>
module attributes {stable_mosaic.version = 11 : i64} {
  func.func @_stream_kernel(%arg0: i32, %arg1: memref<8x32xf32, #tpu.memory_space<vmem>>, %arg2: memref<8x1xi32, #tpu.memory_space<vmem>>, %arg3: memref<8x1xf32, #tpu.memory_space<vmem>>, %arg4: memref<1x1x128xf32, #tpu.memory_space<vmem>>) attributes {dimension_semantics = [#tpu.dimension_semantics<parallel>], iteration_bounds = array<i64: 2>, scalar_prefetch = 0 : i64, scratch_operands = 0 : i64, tpu.core_type = #tpu.core_type<tc>, window_params = [{transform_indices = @transform_0, window_bounds = array<i64: 8, 32>}, {transform_indices = @transform_1, window_bounds = array<i64: 8, 1>}, {transform_indices = @transform_2, window_bounds = array<i64: 8, 1>}, {transform_indices = @transform_3, window_bounds = array<i64: 1, 1, 128>}]} {
    %c0 = arith.constant 0 : index
    %c0_0 = arith.constant 0 : index
    %0 = vector.load %arg1[%c0, %c0_0] : memref<8x32xf32, #tpu.memory_space<vmem>>, vector<8x32xf32>
    %c0_1 = arith.constant 0 : index
    %c0_2 = arith.constant 0 : index
    %1 = vector.load %arg2[%c0_1, %c0_2] : memref<8x1xi32, #tpu.memory_space<vmem>>, vector<8x1xi32>
    %c0_3 = arith.constant 0 : index
    %c0_4 = arith.constant 0 : index
    %2 = vector.load %arg3[%c0_3, %c0_4] : memref<8x1xf32, #tpu.memory_space<vmem>>, vector<8x1xf32>
    %3 = tpu.iota {dimensions = array<i32: 1>} : vector<1x32xi32>
    %4 = vector.broadcast %3 : vector<1x32xi32> to vector<8x32xi32>
    %5 = vector.broadcast %1 : vector<8x1xi32> to vector<8x32xi32>
    %6 = arith.cmpi eq, %4, %5 : vector<8x32xi32>
    %cst = arith.constant 0.000000e+00 : f32
    %7 = vector.broadcast %cst : f32 to vector<8x32xf32>
    %8 = arith.select %6, %0, %7 : vector<8x32xi1>, vector<8x32xf32>
    %cst_5 = arith.constant dense<0.000000e+00> : vector<8xf32>
    %9 = vector.multi_reduction <add>, %8, %cst_5 [1] : vector<8x32xf32> to vector<8xf32>
    %10 = vector.shape_cast %9 : vector<8xf32> to vector<8x1xf32>
    %cst_6 = arith.constant 0.000000e+00 : f32
    %11 = vector.broadcast %cst_6 : f32 to vector<8x1xf32>
    %12 = arith.cmpf one, %2, %11 : vector<8x1xf32>
    %cst_7 = arith.constant 0.000000e+00 : f32
    %13 = vector.broadcast %cst_7 : f32 to vector<8x1xf32>
    %14 = arith.select %12, %10, %13 : vector<8x1xi1>, vector<8x1xf32>
    %15 = arith.mulf %14, %2 : vector<8x1xf32>
    %16 = vector.shape_cast %15 : vector<8x1xf32> to vector<1x8x1xf32>
    %cst_8 = arith.constant dense<0.000000e+00> : vector<1xf32>
    %17 = vector.multi_reduction <add>, %16, %cst_8 [1, 2] : vector<1x8x1xf32> to vector<1xf32>
    %18 = vector.shape_cast %17 : vector<1xf32> to vector<1x1x1xf32>
    %19 = vector.extract %18[0, 0, 0] : f32 from vector<1x1x1xf32>
    %cst_9 = arith.constant 0.000000e+00 : f32
    %20 = arith.subf %cst_9, %19 : f32
    %cst_10 = arith.constant 0.000000e+00 : f32
    %21 = vector.broadcast %cst_10 : f32 to vector<1x1x128xf32>
    %22 = vector.broadcast %20 : f32 to vector<1x1x128xf32>
    %23 = arith.addf %22, %21 : vector<1x1x128xf32>
    %c0_11 = arith.constant 0 : index
    %c0_12 = arith.constant 0 : index
    %c0_13 = arith.constant 0 : index
    %24 = vector.load %arg4[%c0_11, %c0_12, %c0_13] : memref<1x1x128xf32, #tpu.memory_space<vmem>>, vector<1x1x128xf32>
    tpu.vector_store %arg4[%c0_11, %c0_12, %c0_13], %23 {strides = array<i32>} : memref<1x1x128xf32, #tpu.memory_space<vmem>>, vector<1x1x128xf32>,
    return
  }
  func.func @transform_0(%arg0: i32) -> (i32, i32) {
    %c0_i32 = arith.constant 0 : i32
    %c0_i32_0 = arith.constant 0 : i32
    return %arg0, %c0_i32 : i32, i32
  }
  func.func @transform_1(%arg0: i32) -> (i32, i32) {
    %c0_i32 = arith.constant 0 : i32
    %c0_i32_0 = arith.constant 0 : i32
    return %arg0, %c0_i32 : i32, i32
  }
  func.func @transform_2(%arg0: i32) -> (i32, i32) {
    %c0_i32 = arith.constant 0 : i32
    %c0_i32_0 = arith.constant 0 : i32
    return %arg0, %c0_i32 : i32, i32
  }
  func.func @transform_3(%arg0: i32) -> (i32, i32, i32) {
    %c0_i32 = arith.constant 0 : i32
    %c0_i32_0 = arith.constant 0 : i32
    %c0_i32_1 = arith.constant 0 : i32
    return %arg0, %c0_i32, %c0_i32_0 : i32, i32, i32
  }
}

</mosaic_0001>

<bundles_post_ra>
// kernel: tpu_custom_call.1
= control target key start
LH: loop header
LB: loop body
LE: loop exit
PB: predicated region body
PF: predicated region fallthrough
CT: control target
= control target key end

     0   :  { %8 = vsyncpa [#allocation3], 0  ;;  %s551_s0 = inlined_call_operand.vmem [shape: f32[16,32], index: 0, kind: input, shape index: {}]   ;;  %s552_s1 = inlined_call_operand.vmem [shape: s32[16,1], index: 1, kind: input, shape index: {}]   ;;  %s553_s2 = inlined_call_operand.vmem [shape: f32[16,1], index: 2, kind: input, shape index: {}]   ;;  %s554_s3 = inlined_call_operand.hbm [shape: f32[2,1,128], index: 3, kind: output, shape index: {}]  }
   0x1   :  { %10 = vsyncpa [#allocation3 + $0x1], 0  ;;  %s460_s12 = smov 0   ;;  %s462_s13 = smov 0  }
   0x2   :  { %s464_s14 = smov 0   ;;  %s466_s15 = smov 0  }
   0x3 LB: > { %s481_s16 = sadd.s32 4294967295, %s437_s15   ;;  %s323_s17 = sadd.s32 4294967294, %s437_s15   ;;  %s437_s15 = sphi %s466_s15, %s560_s15   ;;  %s433_s14 = sphi %s464_s14, %s559_s14   ;;  %s429_s13 = sphi %s462_s13, %s558_s13   ;;  %s425_s12 = sphi %s460_s12, %s557_s12  }
   0x4   : > { %s485_s18 = sadd.s32 1, %s437_s15   ;;  %s101_s19 = sadd.s32 1, %s433_s14 }
   0x5   : > { %s98_s20 = ssub.s32 %s437_s15, %s485_s18  ;;  %p111_p0 = scmp.ne.s32.totalorder %s433_s14, %s429_s13 }
   0x6   : > { %p99_p1 = scmp.eq.s32.totalorder %s98_s20, 0  ;;  %p112_p2 = scmp.eq.s32.totalorder %s481_s16, 1 }
   0x7   : > { %p117_p3 = scmp.ne.s32.totalorder %s429_s13, %s425_s12  ;;  %p118_p4 = scmp.eq.s32.totalorder %s323_s17, 1 }
   0x8   : > { %s496_s21 = scalar_select %p99_p1, %s433_s14, %s101_s19  }
   0x9   : > { %p498_p5 = por %p112_p2, %p111_p0  ;;  %p502_p6 = por %p118_p4, %p117_p3 }
   0xa   : > { %p326_p7 = scmp.ge.s32.totalorder %s437_s15, 1  ;;  %p157_p8 = scmp.lt.s32.totalorder %s437_s15, 3 }
   0xc   : > { %p158_p9 = pnand %p326_p7, %p157_p8 }
   0xd   : > { %p187_p10 = scmp.lt.s32.totalorder (!%p158_p9), %s481_s16, 1  ;;  %s185_s8 = sand.u32 (!%p158_p9), 1, %s429_s13  }
   0xe   : > { %161 = sbr.rel (%p158_p9) target bundleno = 446 (0x1be), region = 32  ;;  %s240_s11 = scalar_lea.hbm (!%p158_p9), %s554_s3, %s481_s16 }
   0xf   : > { %s186_s17 = scalar_lea.vmem (!%p158_p9), [#allocation2], %s185_s8  ;;  %s244_s20 = sshll.u32 (!%p158_p9), %s240_s11, 4  ;;  %s245_s20 = int_to_ptr.hbm [resolvable:$true] %s244_s20 }
  0x10   : > { %s242_s19 = sshll.u32 (!%p158_p9), %s186_s17, 4  ;;  %s232_s26 = scalar_lea.sflag (!%p158_p9), [#allocation3], %s185_s8  ;;  %s243_s19 = int_to_ptr.vmem [resolvable:$true] %s242_s19 }
  0x11   : > { %s389_s27 = sshra.s32 (!%p158_p9), %s245_s20, 4  ;;  %s390_s27 = int_to_ptr.hbm [resolvable:$true] %s389_s27 }
  0x12   : > { %p396_p0 = scmp.lt.s32.totalorder (!%p158_p9), %s390_s27, %s554_s3 }
  0x13   : > { %v439_v0 = vmov 0   ;;  %s188_s24 = scalar_select %p187_p10, %s481_s16, 1  ;;  %v202_v2 = vlaneseq  ;;  %vm209_vm0 = vcmask 261120   ;;  %vm216_vm3 = vcmask 7168  }
  0x14   : > { %374 = vset.pattern.permute.xlu0 %v439_v0  ;;  %s395_s16 = scalar_lea.hbm %s554_s3, 2 }
  0x15   : > { %s327_s25 = sshll.u32 %s188_s24, 3  ;;  %v203_v3 = vand.u32 127, %v202_v2 }
  0x16   : > { %s194_s28 = scalar_lea.vmem %s552_s1, %s327_s25  ;;  %s190_s4 = scalar_lea.vmem %s551_s0, %s327_s25 }
  0x17   : > { %v200_v1 = vld [vmem:[%s194_s28] sm:$0xff]  ;;  %s198_s7 = scalar_lea.vmem %s553_s2, %s327_s25  ;;  %s391_s28 = scalar_lea.hbm %s390_s27, 1 }
  0x18   : > { %205 = vperm.xlu0 %374, %v200_v1   ;;  %v199_v4 = vld [vmem:[%s190_s4] sm:$0xff]  ;;  %p392_p11 = scmp.ne.s32.totalorder %s390_s27, %s391_s28  ;;  %p397_p1 = scmp.lt.s32.totalorder %s395_s16, %s391_s28 }
  0x19   : > { %v201_v8 = vld [vmem:[%s198_s7] sm:$0xff] }
  0x1a   : > { %vm213_vm2 = vcmp.ne.f32.partialorder %v201_v8, 0.0  ;;  %p393_p12 = pnand %p392_p11, %p498_p5  ;;  %p398_p2 = por %p397_p1, %p396_p0 }
  0x1c   : > { %p394_p13 = pneg %p393_p12 }
  0x1e   : > { %p399_p3 = pnand %p398_p2, %p394_p13 }
  0x8a   : > { %v206_v5 = vpop.permute.xlu0 %205 }
  0x8b   : > { %vm207_vm1 = vcmp.eq.s32.totalorder %v203_v3, %v206_v5 }
  0x8c   : > { %v208_v6 = vsel %vm207_vm1, %v199_v4, 0.0 }
  0x8d   : > { %v210_v7 = vsel %vm209_vm0, %v208_v6, 0.0 }
  0x8e   : > { %211 = vadd.xlane.f32.xlu0 %v210_v7 }
 0x101   : > { %v212_v9 = vpop.xlane.xlu0 %211 }
 0x102   : > { %v214_v10 = vsel %vm213_vm2, %v212_v9, 0.0 }
 0x103   : > { %v215_v11 = vmul.f32 %v214_v10, %v201_v8 }
 0x105   : > { %v217_v12 = vsel %vm216_vm3, %v215_v11, 0.0 }
 0x106   : > { %218 = vadd.xlane.f32.xlu1 %v217_v12 }
 0x179   : > { %v219_v13 = vpop.xlane.xlu1 %218 }
 0x17a   : > { %v220_v14 = vrot.slane %v219_v13, 4 }
 0x17c   : > { %v221_v15 = vadd.f32 %v220_v14, %v219_v13 }
 0x17e   : > { %v222_v16 = vrot.slane %v221_v15, 2 }
 0x180   : > { %v223_v17 = vadd.f32 %v222_v16, %v221_v15 }
 0x182   : > { %v224_v18 = vrot.slane %v223_v17, 1 }
 0x184   : > { %v225_v19 = vadd.f32 %v224_v18, %v223_v17 }
 0x186   : > { %332 = vpush %v225_v19 }
 0x1b7   : > { %s333_s24 = spop %332 }
 0x1b8   : > { %s227_s25 = ssub.f32 0.0, %s333_s24 }
 0x1ba   : > { %v228_v20 = vstv %s227_s25 }
 0x1bb   : > { %230 = vst [vmem:[%s186_s17] sm:$0x1] %v228_v20 }
 0x1bc   : > { %402 = shalt.err (!%p399_p3)
}
 0x1bd   : > { %334 = dma.vmem_to_hbm [thread:$0]  (%p498_p5), %s243_s19, 16, %s245_s20, %s232_s26  }
 0x1be PF: > { %p340_p4 = scmp.ge.s32.totalorder %s437_s15, 2  ;;  %s256_s6 = sand.u32 1, %s425_s12  }
 0x1bf   : > { %s257_s7 = scalar_lea.sflag [#allocation3], %s256_s6 }
 0x1c0   : > { %p337_p7 = pnand %p340_p4, %p502_p6 }
 0x1c2   : > { %p338_p8 = pneg %p337_p7 }
 0x1c4   : > { %420 = dma.done.wait (%p338_p8), %s257_s7, 16  }
 0x1c5   : > { %422 = vsyncadd (%p338_p8), %s257_s7, 4294967280  ;;  %p13_p9 = scmp.ge.s32.totalorder %s485_s18, 4   ;;  %s557_s12 = smov %s429_s13 }
 0x1c6   : > { %s558_s13 = smov %s433_s14  ;;  %s559_s14 = smov %s496_s21 }
 0x1c7   : > { %s560_s15 = smov %s485_s18  ;;  %15 = sbr.rel (!%p13_p9) target bundleno = 3 (0x3), region = 73 }
 0x1cc   :  { %262 = vsyncpa [#allocation3], 1 }
 0x1cd   :  { %264 = vsyncpa [#allocation3 + $0x1], 1 }

</bundles_post_ra>
